<compile_context>
chip_gen: v6e
topology: v6e:2x2x1
jax: 0.10.0
libtpu: 0.0.40
codegen_flags: <defaults>
</compile_context>

<pallas_src>
import functools
import math

import jax
import jax.numpy as jnp
from jax.experimental import pallas as pl
from jax.experimental.pallas import tpu as pltpu


_VMEM_LIMIT = 48 * 1024 * 1024  # > 16/32 MiB scoped defaults, < v7x 64 MiB physical.


# ---------------------------------------------------------------------------
# Tile selection (respects the (8, 128) block-shape rule).
# ---------------------------------------------------------------------------
def _pick_tile(dim, candidates):
    for c in candidates:
        if dim >= c and dim % c == 0:
            return c
    # Small / odd dims: a full-dimension block is always legal.
    # TODO(synk): pl.cdiv grid with masked tails for large non-divisible dims.
    return dim


# ---------------------------------------------------------------------------
# Tiled matmul + bias:  y = x @ w + b   (bf16 MXU operands, f32 accumulation)
# ---------------------------------------------------------------------------
def _matmul_bias_fullk_kernel(x_ref, w_ref, b_ref, o_ref):
    # Full contraction dim resident: single dot, bias added once, single
    # lane-dense store per output tile (no accumulator revisits).
    acc = jnp.dot(x_ref[...], w_ref[...], preferred_element_type=jnp.float32)
    o_ref[...] = (acc + b_ref[...]).astype(o_ref.dtype)


def _matmul_bias_ktiled_kernel(x_ref, w_ref, b_ref, o_ref, acc_ref):
    @pl.when(pl.program_id(2) == 0)
    def _():
        acc_ref[...] = jnp.zeros_like(acc_ref)

    acc_ref[...] += jnp.dot(x_ref[...], w_ref[...],
                            preferred_element_type=jnp.float32)

    @pl.when(pl.program_id(2) == pl.num_programs(2) - 1)
    def _():
        o_ref[...] = (acc_ref[...] + b_ref[...]).astype(o_ref.dtype)


def _matmul_bias(x, w, b, *, out_dtype):
    """x: (M, K) bf16, w: (K, N) bf16, b: (1, N) f32 -> (M, N) out_dtype."""
    M, K = x.shape
    _, N = w.shape
    tm = _pick_tile(M, (256, 128, 64, 32, 16, 8))
    tn = _pick_tile(N, (512, 256, 128))           # lane dim: x128 or full N

    # Resident-K working set (bf16 panels, double-buffered) + f32 output tile.
    resident_bytes = 2 * 2 * K * (tm + tn) + 4 * tm * tn
    if resident_bytes <= 12 * 1024 * 1024:
        return pl.pallas_call(
            _matmul_bias_fullk_kernel,
            out_shape=jax.ShapeDtypeStruct((M, N), out_dtype),
            grid_spec=pltpu.PrefetchScalarGridSpec(
                num_scalar_prefetch=0,
                grid=(M // tm, N // tn),
                in_specs=[
                    pl.BlockSpec((tm, K), lambda i, j: (i, 0)),   # x rows
                    pl.BlockSpec((K, tn), lambda i, j: (0, j)),   # resident weight panel
                    pl.BlockSpec((1, tn), lambda i, j: (0, j)),   # bias
                ],
                out_specs=pl.BlockSpec((tm, tn), lambda i, j: (i, j)),
            ),
            compiler_params=pltpu.CompilerParams(
                dimension_semantics=("parallel", "parallel"),
                vmem_limit_bytes=_VMEM_LIMIT),
        )(x, w, b)

    # Fallback for very large K: k-tiled reduction with a VMEM f32 accumulator.
    tk = _pick_tile(K, (512, 256, 128))
    return pl.pallas_call(
        _matmul_bias_ktiled_kernel,
        out_shape=jax.ShapeDtypeStruct((M, N), out_dtype),
        grid_spec=pltpu.PrefetchScalarGridSpec(
            num_scalar_prefetch=0,
            grid=(M // tm, N // tn, K // tk),
            in_specs=[
                pl.BlockSpec((tm, tk), lambda i, j, k: (i, k)),
                pl.BlockSpec((tk, tn), lambda i, j, k: (k, j)),
                pl.BlockSpec((1, tn), lambda i, j, k: (0, j)),
            ],
            out_specs=pl.BlockSpec((tm, tn), lambda i, j, k: (i, j)),
            scratch_shapes=[pltpu.VMEM((tm, tn), jnp.float32)],
        ),
        compiler_params=pltpu.CompilerParams(
            dimension_semantics=("parallel", "parallel", "arbitrary"),
            vmem_limit_bytes=_VMEM_LIMIT),
    )(x, w, b)


# ---------------------------------------------------------------------------
# Flash-style causal attention core.
# grid = (B*H, q_tiles); K/V are head-resident; the kv reduction is an in-kernel
# fori_loop with dynamic trip count qi (below-diagonal tiles, unmasked) followed
# by one explicitly masked diagonal tile.
# ---------------------------------------------------------------------------
def _flash_attn_kernel(q_ref, k_ref, v_ref, o_ref, *, scale, block):
    qi = pl.program_id(1)
    hd = q_ref.shape[-1]

    # Fold the softmax scale into q once per q tile (block*hd work instead of a
    # block*block multiply on every kv step).
    q = (q_ref[0].astype(jnp.float32) * scale).astype(jnp.bfloat16)   # (block, hd)

    def kv_tile(j):
        start = pl.multiple_of(j * block, block)
        k = k_ref[0, pl.ds(start, block), :]                          # (block, hd) bf16
        v = v_ref[0, pl.ds(start, block), :]                          # (block, hd) bf16
        return k, v

    def attend(carry, k, v, mask_fn):
        m_prev, l_prev, acc_prev = carry
        # s = q @ k.T without materializing the transpose (contract last dims).
        s = jax.lax.dot_general(q, k, (((1,), (1,)), ((), ())),
                                preferred_element_type=jnp.float32)   # (block, block)
        s = mask_fn(s)
        m_new = jnp.maximum(m_prev, jnp.max(s, axis=-1, keepdims=True))
        alpha = jnp.exp(m_prev - m_new)                               # EUP
        p = jnp.exp(s - m_new)                                        # EUP, f32
        l_new = alpha * l_prev + jnp.sum(p, axis=-1, keepdims=True)
        acc_new = alpha * acc_prev + jnp.dot(p.astype(jnp.bfloat16), v,
                                             preferred_element_type=jnp.float32)
        return m_new, l_new, acc_new

    m0 = jnp.full((block, 1), -jnp.inf, jnp.float32)
    l0 = jnp.zeros((block, 1), jnp.float32)
    acc0 = jnp.zeros((block, hd), jnp.float32)

    # Strictly-below-diagonal kv tiles: no masking, dynamic trip count qi.
    def body(j, carry):
        k, v = kv_tile(j)
        return attend(carry, k, v, lambda s: s)

    m, l, acc = jax.lax.fori_loop(0, qi, body, (m0, l0, acc0))

    # Diagonal tile: mask columns above the diagonal (every row keeps >=1 key,
    # so -inf masking never produces a fully-masked row / NaN in the causal case).
    k, v = kv_tile(qi)

    def diag_mask(s):
        row = qi * block + jax.lax.broadcasted_iota(jnp.int32, s.shape, 0)
        col = qi * block + jax.lax.broadcasted_iota(jnp.int32, s.shape, 1)
        return jnp.where(col <= row, s, -jnp.inf)

    m, l, acc = attend((m, l, acc), k, v, diag_mask)

    # approx reciprocal runs on the EUP slot; ~1e-3 rel error, fine for bf16 out.
    inv_l = pl.reciprocal(l, approx=True)
    o_ref[0] = (acc * inv_l).astype(o_ref.dtype)


def _flash_attention(q, k, v, *, scale):
    """q, k, v: (B*H, T, hd) bf16. Returns causal attention, (B*H, T, hd) bf16."""
    BH, T, hd = q.shape
    if T % 256 == 0:
        block = 256
    elif T % 128 == 0:
        block = 128
    else:
        block = T
    n_q_tiles = T // block

    # K + V head-resident working set (bf16, x2 for buffering) must fit VMEM.
    # TODO(synk): chunk K/V with pltpu.emit_pipeline for very long sequences.
    assert 8 * T * hd <= 40 * 1024 * 1024, "head-resident K/V exceeds VMEM budget"

    kernel = functools.partial(_flash_attn_kernel, scale=scale, block=block)
    return pl.pallas_call(
        kernel,
        out_shape=jax.ShapeDtypeStruct((BH, T, hd), jnp.bfloat16),
        grid_spec=pltpu.PrefetchScalarGridSpec(
            num_scalar_prefetch=0,
            grid=(BH, n_q_tiles),
            in_specs=[
                pl.BlockSpec((1, block, hd), lambda b, i: (b, i, 0)),  # q tile
                pl.BlockSpec((1, T, hd), lambda b, i: (b, 0, 0)),      # K (head-resident)
                pl.BlockSpec((1, T, hd), lambda b, i: (b, 0, 0)),      # V (head-resident)
            ],
            out_specs=pl.BlockSpec((1, block, hd), lambda b, i: (b, i, 0)),
        ),
        compiler_params=pltpu.CompilerParams(
            dimension_semantics=("parallel", "parallel"),
            vmem_limit_bytes=_VMEM_LIMIT),
    )(q, k, v)


# ---------------------------------------------------------------------------
# Full module forward.
# ---------------------------------------------------------------------------
def causal_self_attention(x, w_attn, b_attn, w_proj, b_proj, *, n_head: int):
    """x: (B, T, C). Weights stored (in_features, out_features): y = x @ W + b."""
    B, T, C = x.shape
    assert C % n_head == 0
    hd = C // n_head
    scale = 1.0 / math.sqrt(hd)

    x2 = x.reshape(B * T, C).astype(jnp.bfloat16)
    w_attn_bf = w_attn.astype(jnp.bfloat16)
    w_proj_bf = w_proj.astype(jnp.bfloat16)

    # Fused qkv projection (weight-resident Pallas matmul); bf16 feeds attention.
    qkv = _matmul_bias(x2, w_attn_bf, b_attn, out_dtype=jnp.bfloat16)  # (B*T, 3C)

    # Head split with ONE fused transpose (layout plumbing stays wrapper-side).
    qkv = qkv.reshape(B, T, 3, n_head, hd).transpose(2, 0, 3, 1, 4)    # (3,B,H,T,hd)
    q = qkv[0].reshape(B * n_head, T, hd)
    k = qkv[1].reshape(B * n_head, T, hd)
    v = qkv[2].reshape(B * n_head, T, hd)

    y = _flash_attention(q, k, v, scale=scale)                         # (B*H, T, hd)

    # Head merge + output projection.
    y = y.reshape(B, n_head, T, hd).transpose(0, 2, 1, 3).reshape(B * T, C)
    out = _matmul_bias(y, w_proj_bf, b_proj, out_dtype=x.dtype)        # (B*T, C)
    return out.reshape(B, T, C)


# ---------------------------------------------------------------------------
# Pure-JAX reference (replica of the PyTorch forward) and tests.
# ---------------------------------------------------------------------------
def _reference(x, w_attn, b_attn, w_proj, b_proj, n_head):
    B, T, C = x.shape
    hd = C // n_head
    qkv = x @ w_attn + b_attn[0]
    q, k, v = jnp.split(qkv, 3, axis=-1)
    q = q.reshape(B, T, n_head, hd).transpose(0, 2, 1, 3)
    k = k.reshape(B, T, n_head, hd).transpose(0, 2, 1, 3)
    v = v.reshape(B, T, n_head, hd).transpose(0, 2, 1, 3)
    att = (q @ k.transpose(0, 1, 3, 2)) / math.sqrt(hd)
    mask = jnp.tril(jnp.ones((T, T), dtype=bool))
    att = jnp.where(mask[None, None], att, -jnp.inf)
    att = jax.nn.softmax(att, axis=-1)
    y = att @ v
    y = y.transpose(0, 2, 1, 3).reshape(B, T, C)
    return y @ w_proj + b_proj[0]


def _run_case(B, T, C, n_head, key):
    kx, k1, k2, k3, k4 = jax.random.split(key, 5)
    x = jax.random.normal(kx, (B, T, C), dtype=jnp.float32)
    w_attn = jax.random.normal(k1, (C, 3 * C), dtype=jnp.float32) * 0.02
    b_attn = jax.random.normal(k2, (1, 3 * C), dtype=jnp.float32) * 0.01
    w_proj = jax.random.normal(k3, (C, C), dtype=jnp.float32) * 0.02
    b_proj = jax.random.normal(k4, (1, C), dtype=jnp.float32) * 0.01

    out = causal_self_attention(x, w_attn, b_attn, w_proj, b_proj, n_head=n_head)
    out = jax.block_until_ready(out)
    ref = _reference(x, w_attn, b_attn, w_proj, b_proj, n_head)

    assert out.shape == (B, T, C)
    # bf16 MXU operands (f32 accumulation) => loosened tolerance vs the f32 ref.
    assert jnp.allclose(out, ref, atol=2e-2, rtol=2e-2), (
        f"mismatch vs reference (B={B}, T={T}, C={C}, H={n_head}), "
        f"max_err={float(jnp.max(jnp.abs(out - ref)))}")


if __name__ == "__main__":
    key = jax.random.PRNGKey(0)
    key_small, key_tiled = jax.random.split(key)

    # Small, single-tile config (fallback path: block == T).
    _run_case(2, 8, 32, 4, key_small)

    # Tiled config: block=256, two q tiles per head — exercises the in-kernel
    # dynamic-trip-count kv loop, diagonal masking and weight-resident matmuls.
    _run_case(2, 512, 128, 2, key_tiled)

    print("KERNEL_OK")
</pallas_src>

<mosaic_0001>
module attributes {stable_mosaic.version = 11 : i64} {
  func.func @_matmul_bias_fullk_kernel(%arg0: i32, %arg1: i32, %arg2: memref<16x32xbf16, #tpu.memory_space<vmem>>, %arg3: memref<32x96xbf16, #tpu.memory_space<vmem>>, %arg4: memref<1x96xf32, #tpu.memory_space<vmem>>, %arg5: memref<16x96xbf16, #tpu.memory_space<vmem>>) attributes {dimension_semantics = [#tpu.dimension_semantics<parallel>, #tpu.dimension_semantics<parallel>], iteration_bounds = array<i64: 1, 1>, scalar_prefetch = 0 : i64, scratch_operands = 0 : i64, tpu.core_type = #tpu.core_type<tc>, window_params = [{transform_indices = @transform_0, window_bounds = array<i64: 16, 32>}, {transform_indices = @transform_1, window_bounds = array<i64: 32, 96>}, {transform_indices = @transform_2, window_bounds = array<i64: 1, 96>}, {transform_indices = @transform_3, window_bounds = array<i64: 16, 96>}]} {
    %c0 = arith.constant 0 : index
    %c0_0 = arith.constant 0 : index
    %0 = vector.load %arg2[%c0, %c0_0] : memref<16x32xbf16, #tpu.memory_space<vmem>>, vector<16x32xbf16>
    %c0_1 = arith.constant 0 : index
    %c0_2 = arith.constant 0 : index
    %1 = vector.load %arg3[%c0_1, %c0_2] : memref<32x96xbf16, #tpu.memory_space<vmem>>, vector<32x96xbf16>
    %cst = arith.constant dense<0.000000e+00> : vector<16x96xf32>
    %2 = tpu.matmul %0, %1, %cst {dimension_numbers = #tpu.dot_dimension_numbers<[1], [0], [0], [1], [0, 0, 1, 1], [], []>} : vector<16x32xbf16>, vector<32x96xbf16>, vector<16x96xf32> -> vector<16x96xf32>
    %c0_3 = arith.constant 0 : index
    %c0_4 = arith.constant 0 : index
    %3 = vector.load %arg4[%c0_3, %c0_4] : memref<1x96xf32, #tpu.memory_space<vmem>>, vector<1x96xf32>
    %4 = vector.broadcast %3 : vector<1x96xf32> to vector<16x96xf32>
    %5 = arith.addf %2, %4 : vector<16x96xf32>
    %6 = arith.truncf %5 : vector<16x96xf32> to vector<16x96xbf16>
    %c0_5 = arith.constant 0 : index
    %c0_6 = arith.constant 0 : index
    %7 = vector.load %arg5[%c0_5, %c0_6] : memref<16x96xbf16, #tpu.memory_space<vmem>>, vector<16x96xbf16>
    tpu.vector_store %arg5[%c0_5, %c0_6], %6 {strides = array<i32>} : memref<16x96xbf16, #tpu.memory_space<vmem>>, vector<16x96xbf16>,
    return
  }
  func.func @transform_0(%arg0: i32, %arg1: i32) -> (i32, i32) {
    %c0_i32 = arith.constant 0 : i32
    %c0_i32_0 = arith.constant 0 : i32
    return %arg0, %c0_i32 : i32, i32
  }
  func.func @transform_1(%arg0: i32, %arg1: i32) -> (i32, i32) {
    %c0_i32 = arith.constant 0 : i32
    %c0_i32_0 = arith.constant 0 : i32
    return %c0_i32, %arg1 : i32, i32
  }
  func.func @transform_2(%arg0: i32, %arg1: i32) -> (i32, i32) {
    %c0_i32 = arith.constant 0 : i32
    %c0_i32_0 = arith.constant 0 : i32
    return %c0_i32, %arg1 : i32, i32
  }
  func.func @transform_3(%arg0: i32, %arg1: i32) -> (i32, i32) {
    %c0_i32 = arith.constant 0 : i32
    return %arg0, %arg1 : i32, i32
  }
}

</mosaic_0001>

<bundles_post_ra>
// kernel: tpu_custom_call.1
= control target key start
LH: loop header
LB: loop body
LE: loop exit
PB: predicated region body
PF: predicated region fallthrough
CT: control target
= control target key end

     0   :  { %8 = vsyncpa [#allocation3], 0  ;;  %s292_s0 = inlined_call_operand.hbm [shape: bf16[16,32], index: 0, kind: input, shape index: {}]   ;;  %s293_s1 = inlined_call_operand.hbm [shape: bf16[32,96], index: 1, kind: input, shape index: {}]   ;;  %s294_s2 = inlined_call_operand.vmem [shape: f32[1,96], index: 2, kind: input, shape index: {}]   ;;  %s295_s3 = inlined_call_operand.hbm [shape: bf16[16,96], index: 3, kind: output, shape index: {}]  }
   0x1   :  { %9 = vsyncpa [#allocation6], 0 }
   0x2   :  { %10 = vsyncpa [#allocation4], 0  ;;  %s244_s12 = smov [#allocation2]  }
   0x3   :  { %s16_s13 = sshll.u32 %s244_s12, 4  ;;  %s17_s13 = int_to_ptr.vmem [resolvable:$true] %s16_s13 }
   0x4   :  { %s186_s14 = scalar_lea.vmem %s17_s13, 128  ;;  %p191_p1 = scmp.lt.s32.totalorder %s17_s13, %s17_s13 }
   0x5   :  { %p187_p0 = scmp.ne.s32.totalorder %s17_s13, %s186_s14  ;;  %p192_p2 = scmp.lt.s32.totalorder %s186_s14, %s186_s14 }
   0x7   :  { %p193_p3 = por %p192_p2, %p191_p1 }
   0x9   :  { %p194_p4 = pnand %p193_p3, %p187_p0 }
   0xb   :  { %197 = shalt.err (!%p194_p4)
}
   0xc   :  { %s245_s15 = smov 64   ;;  %s246_s16 = smov 4  }
   0xd   :  { %22 = dma.hbm_to_vmem [thread:$0]  %s292_s0, 128, %s17_s13, [#allocation3], %s245_s15, %s245_s15, %s246_s16  }
   0xe   :  { %s247_s19 = smov [#allocation5]  }
   0xf   :  { %s28_s20 = sshll.u32 %s247_s19, 4  ;;  %s29_s20 = int_to_ptr.vmem [resolvable:$true] %s28_s20 }
  0x10   :  { %s206_s21 = scalar_lea.vmem %s29_s20, 256  ;;  %p211_p6 = scmp.lt.s32.totalorder %s29_s20, %s29_s20 }
  0x11   :  { %p207_p5 = scmp.ne.s32.totalorder %s29_s20, %s206_s21  ;;  %p212_p7 = scmp.lt.s32.totalorder %s206_s21, %s206_s21 }
  0x13   :  { %p213_p8 = por %p212_p7, %p211_p6 }
  0x15   :  { %p214_p9 = pnand %p213_p8, %p207_p5 }
  0x17   :  { %217 = shalt.err (!%p214_p9)
}
  0x18   :  { %34 = dma.hbm_to_vmem [thread:$0]  %s293_s1, 256, %s29_s20, [#allocation6], %s245_s15, %s245_s15, %s246_s16  }
  0x19   :  { %238 = dma.done.wait [#allocation3], 128  }
  0x1a   :  { %239 = vsyncadd [#allocation3], 4294967168 }
  0x1b   :  { %240 = dma.done.wait [#allocation6], 256  }
  0x1c   :  { %241 = vsyncadd [#allocation6], 4294967040  ;;  %v248_v0 = vmov 0.0   ;;  %vm249_vm0 = vmmov 0   ;;  %v175_v1 = vld [vmem:[#allocation5 + $0x8] sm:$0xff]   ;;  %v176_v2 = vld [vmem:[#allocation5] sm:$0xff]  }
  0x1d   :  { %160 = vmatprep.subr.bf16.mxu0 %v248_v0  ;;  %164 = vmatprep.mubr.msk.bf16.mxu0 %vm249_vm0, %v248_v0  ;;  %v177_v3 = vld [vmem:[#allocation2] sm:$0xff]   ;;  %vm74_vm1 = vcmask 261120   ;;  %vm127_vm2 = vcmask 781312   ;;  %s250_s1 = smov [#allocation7]  }
  0x1e   :  { %161 = vmatpush3.bf16.msra.mxu0 %v175_v1  ;;  %v148_v4 = vld [vmem:[%s294_s2] ss:$0 sm:$0xff]  ;;  %s135_s25 = sshll.u32 %s250_s1, 4  ;;  %s136_s25 = int_to_ptr.vmem [resolvable:$true] %s135_s25 }
  0x1f   :  { %162 = vmatprep.subr.bf16.mxu0 %v248_v0  ;;  %s218_s26 = scalar_lea.vmem %s136_s25, 128  ;;  %p223_p11 = scmp.lt.s32.totalorder %s136_s25, %s136_s25 }
  0x20   :  { %p219_p10 = scmp.ne.s32.totalorder %s136_s25, %s218_s26  ;;  %p224_p12 = scmp.lt.s32.totalorder %s218_s26, %s218_s26 }
  0x22   :  { %163 = vmatpush3.bf16.msra.mxu0 %v176_v2  ;;  %p225_p13 = por %p224_p12, %p223_p11 }
  0x24   :  { %p226_p0 = pnand %p225_p13, %p219_p10 }
  0x25   :  { %165 = vmatmul.mubr.msk.bf16.vlgmr.msra.gmra.mxu0 %vm74_vm1, %v177_v3 }
  0xe5   :  { %v112_v5 = vpop.f32.mrf.mxu0 }
  0xe6   :  { %v113_v6 = vadd.f32 %v148_v4, %v112_v5 }
  0xe7   :  { %v166_v7 = vpop.f32.mrf.mxu0 }
  0xe8   :  { %v155_v8 = vpack.c.bf16 %v113_v6, %v113_v6 }
  0xe9   :  { %v115_v9 = vpop.f32.mrf.mxu0 }
  0xea   :  { %v116_v10 = vadd.f32 %v148_v4, %v115_v9  ;;  %128 = vst.msk [vmem:[#allocation7] sm:$0xf] %vm127_vm2, %v155_v8 }
  0xeb   :  { %v167_v11 = vpop.f32.mrf.mxu0 }
  0xec   :  { %v156_v12 = vpack.c.bf16 %v116_v10, %v116_v10 }
  0xee   :  { %129 = vst.msk [vmem:[#allocation7 + $0x4] sm:$0xf] %vm127_vm2, %v156_v12 }
  0xef   :  { %229 = shalt.err (!%p226_p0)
}
  0xf0   :  { %141 = dma.vmem_to_hbm [thread:$0]  %s136_s25, 128, %s295_s3, [#allocation4], %s245_s15, %s245_s15, %s246_s16  }
  0xf1   :  { %242 = dma.done.wait [#allocation4], 128  }
  0xf2   :  { %243 = vsyncadd [#allocation4], 4294967168 }
  0xf3   :  { %145 = vsyncpa [#allocation3], 1 }
  0xf4   :  { %146 = vsyncpa [#allocation6], 1 }
  0xf5   :  { %147 = vsyncpa [#allocation4], 1 }

</bundles_post_ra>
